<compile_context>
chip_gen: v5e
topology: v5e:2x2
jax: 0.10.0
libtpu: 0.0.40
codegen_flags: <defaults>
</compile_context>

<pallas_src>
import jax
import jax.numpy as jnp
from jax.experimental import pallas as pl
from jax.experimental.pallas import tpu as pltpu

# ---- module hyperparameters (small, consistent with the torch module) ------
GAIN_IN   = 8                   # gain_in_size
HIST_IN   = 24                  # history_in_size
HIST_OUT  = 16                  # history_out_size
ENC_SIZES = [32, 32]            # encoder_layer_sizes
LAYERS    = [256, 256, 256]     # layer_sizes
N_BASES   = 4
N_TARGETS = 8
BATCH     = 8

ENC_PAD   = 32                  # padded width of the encoder activations
IN_W      = GAIN_IN + HIST_IN   # 32 : width of x
BIAS_ROW  = 128                 # first bias row inside the f32 slab
SLAB_ROWS = BIAS_ROW + 8        # 136 rows (multiple of 8)


# ---------------------------------------------------------------------------
# Pallas kernel: whole forward (encoder MLP + main MLP, last_layer pre-folded)
#   x_ref    : (BP, 32)        f32
#   slab_ref : (136, 256)      f32   [wenc0 | wenc1 | wenc2 | w0 | biases]
#   wb_ref   : (3, 256, 256)   bf16  [w1, w2, w3_eff (cols 8:256 zero)]
#   out_ref  : (BP, 256)       f32   (cols N_TARGETS: are zero)
# ---------------------------------------------------------------------------
def _lsr_kernel(x_ref, slab_ref, wb_ref, out_ref):
    f32 = jnp.float32
    bf16 = jnp.bfloat16
    relu = lambda v: jnp.maximum(v, 0.0)

    x = x_ref[...]                                            # (BP, 32) f32

    # ---- encoder_network(history) ---------------------------------------
    # wenc0 is lifted to consume the full 32-wide x (gain rows are zero).
    h = relu(jnp.dot(x, slab_ref[0:32, 0:ENC_PAD], preferred_element_type=f32)
             + slab_ref[BIAS_ROW + 0:BIAS_ROW + 1, 0:ENC_PAD])
    h = relu(jnp.dot(h, slab_ref[32:64, 0:ENC_PAD], preferred_element_type=f32)
             + slab_ref[BIAS_ROW + 1:BIAS_ROW + 2, 0:ENC_PAD])
    # final encoder layer: output already shifted to cols 8:24 (rest zero)
    h = (jnp.dot(h, slab_ref[64:96, 0:ENC_PAD], preferred_element_type=f32)
         + slab_ref[BIAS_ROW + 2:BIAS_ROW + 3, 0:ENC_PAD])    # (BP, 32)

    # ---- torch.cat([g, history_out]) as a single lane select ------------
    lane = jax.lax.broadcasted_iota(jnp.int32, x.shape, 1)
    net_in = jnp.where(lane < GAIN_IN, x, h)                  # (BP, 32)

    # ---- main net --------------------------------------------------------
    z = relu(jnp.dot(net_in, slab_ref[96:128, :], preferred_element_type=f32)
             + slab_ref[BIAS_ROW + 3:BIAS_ROW + 4, :])

    # two 256x256 layers: bf16 operands into the MXU, f32 accumulate / bias
    z = relu(jnp.dot(z.astype(bf16), wb_ref[0], preferred_element_type=f32)
             + slab_ref[BIAS_ROW + 4:BIAS_ROW + 5, :])
    z = relu(jnp.dot(z.astype(bf16), wb_ref[1], preferred_element_type=f32)
             + slab_ref[BIAS_ROW + 5:BIAS_ROW + 6, :])

    # final layer with last_layer folded in; full-lane (256) unmasked store,
    # columns N_TARGETS: are zero by construction.
    out_ref[...] = (jnp.dot(z.astype(bf16), wb_ref[2], preferred_element_type=f32)
                    + slab_ref[BIAS_ROW + 6:BIAS_ROW + 7, :])


# ---------------------------------------------------------------------------
# Host-side packing of the torch-style parameter dict into 2 kernel operands
# ---------------------------------------------------------------------------
def pack_params(p):
    f32 = jnp.float32

    # ---- f32 slab (136, 256) ---------------------------------------------
    slab = jnp.zeros((SLAB_ROWS, LAYERS[0]), f32)
    # rows 0:32   encoder layer 0, lifted onto full x (gain rows zero)
    slab = slab.at[GAIN_IN:IN_W, :ENC_SIZES[0]].set(p["we0"])
    # rows 32:64  encoder layer 1
    slab = slab.at[32:32 + ENC_SIZES[0], :ENC_SIZES[1]].set(p["we1"])
    # rows 64:96  encoder layer 2, output shifted to cols 8:24 (concat layout)
    slab = slab.at[64:64 + ENC_SIZES[1],
                   GAIN_IN:GAIN_IN + HIST_OUT].set(p["we2"])
    # rows 96:128 main-net first layer: rows 0:8 gain, 8:24 hist_out, 24:32 zero
    slab = slab.at[96:96 + GAIN_IN + HIST_OUT, :].set(p["w0"])

    # Fold last_layer into the final linear layer.
    w3_eff = jnp.einsum("kbt,b->kt",
                        p["w3"].reshape(LAYERS[2], N_BASES, N_TARGETS),
                        p["last_layer"])
    b3_eff = jnp.einsum("bt,b->t",
                        p["b3"].reshape(N_BASES, N_TARGETS), p["last_layer"])

    # bias rows 128:135
    slab = slab.at[BIAS_ROW + 0, :ENC_SIZES[0]].set(p["be0"])
    slab = slab.at[BIAS_ROW + 1, :ENC_SIZES[1]].set(p["be1"])
    slab = slab.at[BIAS_ROW + 2, GAIN_IN:GAIN_IN + HIST_OUT].set(p["be2"])
    slab = slab.at[BIAS_ROW + 3, :].set(p["b0"])
    slab = slab.at[BIAS_ROW + 4, :].set(p["b1"])
    slab = slab.at[BIAS_ROW + 5, :].set(p["b2"])
    slab = slab.at[BIAS_ROW + 6, :N_TARGETS].set(b3_eff)

    # ---- bf16 slab (3, 256, 256): dominant HBM traffic, halved vs f32 ----
    wb = jnp.zeros((3, LAYERS[0], LAYERS[0]), jnp.bfloat16)
    wb = wb.at[0].set(p["w1"].astype(jnp.bfloat16))
    wb = wb.at[1].set(p["w2"].astype(jnp.bfloat16))
    wb = wb.at[2, :, :N_TARGETS].set(w3_eff.astype(jnp.bfloat16))

    return dict(slab=slab, wbig=wb)


def lsr_basis_net_encoder_forward(x, packed):
    """x: (B, GAIN_IN + HIST_IN) float32 -> (B, N_TARGETS) float32."""
    B = x.shape[0]
    # Pad batch to a multiple of 16 rows so bf16 activations fill a packed
    # [16, 128] vreg exactly (pad rows are zeros, sliced off at the end).
    BP = max(16, ((B + 15) // 16) * 16)
    x_p = jnp.zeros((BP, IN_W), jnp.float32).at[:B].set(x)

    flops = 2 * BP * (3 * ENC_PAD * ENC_PAD
                      + ENC_PAD * LAYERS[0]
                      + 3 * LAYERS[0] * LAYERS[0])
    bytes_accessed = (BP * IN_W * 4                      # x
                      + SLAB_ROWS * LAYERS[0] * 4        # f32 slab
                      + 3 * LAYERS[0] * LAYERS[0] * 2    # bf16 slab
                      + BP * LAYERS[0] * 4)              # output

    vmem = pl.BlockSpec(memory_space=pltpu.MemorySpace.VMEM)
    out = pl.pallas_call(
        _lsr_kernel,
        out_shape=jax.ShapeDtypeStruct((BP, LAYERS[0]), jnp.float32),
        in_specs=[vmem, vmem, vmem],
        out_specs=vmem,
        cost_estimate=pl.CostEstimate(flops=flops, transcendentals=0,
                                      bytes_accessed=bytes_accessed),
    )(x_p, packed["slab"], packed["wbig"])
    return out[:B, :N_TARGETS]


# ---------------------------------------------------------------------------
# Deterministic parameter init (torch nn.Linear style: U(-1/sqrt(fan_in), ..))
# ---------------------------------------------------------------------------
def _linear(key, fan_in, fan_out):
    kw, kb = jax.random.split(key)
    bound = 1.0 / jnp.sqrt(fan_in)
    w = jax.random.uniform(kw, (fan_in, fan_out), jnp.float32, -bound, bound)
    b = jax.random.uniform(kb, (fan_out,), jnp.float32, -bound, bound)
    return w, b


def init_params(key):
    keys = jax.random.split(key, 8)
    p = {}
    # encoder_network: HIST_IN -> 32 -> 32 -> HIST_OUT
    p["we0"], p["be0"] = _linear(keys[0], HIST_IN, ENC_SIZES[0])
    p["we1"], p["be1"] = _linear(keys[1], ENC_SIZES[0], ENC_SIZES[1])
    p["we2"], p["be2"] = _linear(keys[2], ENC_SIZES[1], HIST_OUT)
    # main net: (GAIN_IN + HIST_OUT) -> 256 -> 256 -> 256 -> N_BASES*N_TARGETS
    p["w0"], p["b0"] = _linear(keys[3], GAIN_IN + HIST_OUT, LAYERS[0])
    p["w1"], p["b1"] = _linear(keys[4], LAYERS[0], LAYERS[1])
    p["w2"], p["b2"] = _linear(keys[5], LAYERS[1], LAYERS[2])
    p["w3"], p["b3"] = _linear(keys[6], LAYERS[2], N_BASES * N_TARGETS)
    # torch inits last_layer to zeros; use nonzero values here for a
    # non-trivial numerical check (semantics identical).
    p["last_layer"] = jax.random.normal(keys[7], (N_BASES,), jnp.float32)
    return p


# ---------------------------------------------------------------------------
# Pure-JAX reference of the torch forward.  quantized=True emulates the
# kernel's bf16 feeding of the w1/w2/w3 layers (f32 accumulation).
# ---------------------------------------------------------------------------
def reference_forward(x, p, quantized=False):
    hp = jax.lax.Precision.HIGHEST
    f32 = jnp.float32
    q = (lambda a: a.astype(jnp.bfloat16).astype(f32)) if quantized else (lambda a: a)
    g = x[:, :GAIN_IN]
    h = x[:, GAIN_IN:]
    h = jax.nn.relu(jnp.dot(h, p["we0"], precision=hp) + p["be0"])
    h = jax.nn.relu(jnp.dot(h, p["we1"], precision=hp) + p["be1"])
    h = jnp.dot(h, p["we2"], precision=hp) + p["be2"]
    z = jnp.concatenate([g, h], axis=-1)
    z = jax.nn.relu(jnp.dot(z, p["w0"], precision=hp) + p["b0"])
    z = jax.nn.relu(jnp.dot(q(z), q(p["w1"]), precision=hp) + p["b1"])
    z = jax.nn.relu(jnp.dot(q(z), q(p["w2"]), precision=hp) + p["b2"])
    if quantized:
        # mirror the kernel: fold last_layer first, bf16 operands on final dot
        w3_eff = jnp.einsum("kbt,b->kt",
                            p["w3"].reshape(LAYERS[2], N_BASES, N_TARGETS),
                            p["last_layer"])
        b3_eff = jnp.einsum("bt,b->t",
                            p["b3"].reshape(N_BASES, N_TARGETS), p["last_layer"])
        return jnp.dot(q(z), q(w3_eff), precision=hp) + b3_eff
    out_flat = jnp.dot(z, p["w3"], precision=hp) + p["b3"]
    out_rs = out_flat.reshape(x.shape[0], N_BASES, N_TARGETS)
    return jnp.sum(out_rs * p["last_layer"][None, :, None], axis=-2)


if __name__ == "__main__":
    key = jax.random.PRNGKey(0)
    kx, kp = jax.random.split(key)
    x = jax.random.normal(kx, (BATCH, GAIN_IN + HIST_IN), jnp.float32)
    params = init_params(kp)
    packed = pack_params(params)

    out = lsr_basis_net_encoder_forward(x, packed)
    out = jax.block_until_ready(out)
    assert out.shape == (BATCH, N_TARGETS)

    # Strict check: reference that applies the same bf16 rounding to w1/w2/w3.
    ref_q = reference_forward(x, params, quantized=True)
    assert jnp.allclose(out, ref_q, atol=2e-3, rtol=2e-3), (out, ref_q)

    # Sanity check vs the pure-f32 torch-equivalent forward; bf16 weight
    # storage for the large layers is the intentional perf tradeoff
    # (accumulation stays f32), so a looser tolerance applies here.
    ref = reference_forward(x, params, quantized=False)
    assert jnp.allclose(out, ref, atol=5e-2, rtol=5e-2), (out, ref)

    print("KERNEL_OK")
</pallas_src>

<mosaic_0001>
module attributes {stable_mosaic.version = 11 : i64} {
  func.func @_lsr_kernel(%arg0: memref<16x32xf32, #tpu.memory_space<vmem>>, %arg1: memref<136x256xf32, #tpu.memory_space<vmem>>, %arg2: memref<3x256x256xbf16, #tpu.memory_space<vmem>>, %arg3: memref<16x256xf32, #tpu.memory_space<vmem>>) attributes {dimension_semantics = [], scalar_prefetch = 0 : i64, scratch_operands = 0 : i64, tpu.core_type = #tpu.core_type<tc>} {
    %c0 = arith.constant 0 : index
    %c0_0 = arith.constant 0 : index
    %0 = vector.load %arg0[%c0, %c0_0] : memref<16x32xf32, #tpu.memory_space<vmem>>, vector<16x32xf32>
    %c0_1 = arith.constant 0 : index
    %c0_2 = arith.constant 0 : index
    %1 = vector.load %arg1[%c0_1, %c0_2] : memref<136x256xf32, #tpu.memory_space<vmem>>, vector<32x32xf32>
    %cst = arith.constant dense<0.000000e+00> : vector<16x32xf32>
    %2 = tpu.matmul %0, %1, %cst {dimension_numbers = #tpu.dot_dimension_numbers<[1], [0], [0], [1], [0, 0, 1, 1], [], []>} : vector<16x32xf32>, vector<32x32xf32>, vector<16x32xf32> -> vector<16x32xf32>
    %c128 = arith.constant 128 : index
    %c0_3 = arith.constant 0 : index
    %3 = vector.load %arg1[%c128, %c0_3] : memref<136x256xf32, #tpu.memory_space<vmem>>, vector<1x32xf32>
    %4 = vector.broadcast %3 : vector<1x32xf32> to vector<16x32xf32>
    %5 = arith.addf %2, %4 : vector<16x32xf32>
    %cst_4 = arith.constant 0.000000e+00 : f32
    %6 = vector.broadcast %cst_4 : f32 to vector<16x32xf32>
    %7 = arith.maximumf %5, %6 : vector<16x32xf32>
    %c32 = arith.constant 32 : index
    %c0_5 = arith.constant 0 : index
    %8 = vector.load %arg1[%c32, %c0_5] : memref<136x256xf32, #tpu.memory_space<vmem>>, vector<32x32xf32>
    %cst_6 = arith.constant dense<0.000000e+00> : vector<16x32xf32>
    %9 = tpu.matmul %7, %8, %cst_6 {dimension_numbers = #tpu.dot_dimension_numbers<[1], [0], [0], [1], [0, 0, 1, 1], [], []>} : vector<16x32xf32>, vector<32x32xf32>, vector<16x32xf32> -> vector<16x32xf32>
    %c129 = arith.constant 129 : index
    %c0_7 = arith.constant 0 : index
    %10 = vector.load %arg1[%c129, %c0_7] : memref<136x256xf32, #tpu.memory_space<vmem>>, vector<1x32xf32>
    %11 = vector.broadcast %10 : vector<1x32xf32> to vector<16x32xf32>
    %12 = arith.addf %9, %11 : vector<16x32xf32>
    %cst_8 = arith.constant 0.000000e+00 : f32
    %13 = vector.broadcast %cst_8 : f32 to vector<16x32xf32>
    %14 = arith.maximumf %12, %13 : vector<16x32xf32>
    %c64 = arith.constant 64 : index
    %c0_9 = arith.constant 0 : index
    %15 = vector.load %arg1[%c64, %c0_9] : memref<136x256xf32, #tpu.memory_space<vmem>>, vector<32x32xf32>
    %cst_10 = arith.constant dense<0.000000e+00> : vector<16x32xf32>
    %16 = tpu.matmul %14, %15, %cst_10 {dimension_numbers = #tpu.dot_dimension_numbers<[1], [0], [0], [1], [0, 0, 1, 1], [], []>} : vector<16x32xf32>, vector<32x32xf32>, vector<16x32xf32> -> vector<16x32xf32>
    %c130 = arith.constant 130 : index
    %c0_11 = arith.constant 0 : index
    %17 = vector.load %arg1[%c130, %c0_11] : memref<136x256xf32, #tpu.memory_space<vmem>>, vector<1x32xf32>
    %18 = vector.broadcast %17 : vector<1x32xf32> to vector<16x32xf32>
    %19 = arith.addf %16, %18 : vector<16x32xf32>
    %20 = tpu.iota {dimensions = array<i32: 1>} : vector<16x32xi32>
    %c8_i32 = arith.constant 8 : i32
    %21 = vector.broadcast %c8_i32 : i32 to vector<16x32xi32>
    %22 = arith.cmpi slt, %20, %21 : vector<16x32xi32>
    %23 = arith.select %22, %0, %19 : vector<16x32xi1>, vector<16x32xf32>
    %c96 = arith.constant 96 : index
    %c0_12 = arith.constant 0 : index
    %24 = vector.load %arg1[%c96, %c0_12] : memref<136x256xf32, #tpu.memory_space<vmem>>, vector<32x256xf32>
    %cst_13 = arith.constant dense<0.000000e+00> : vector<16x256xf32>
    %25 = tpu.matmul %23, %24, %cst_13 {dimension_numbers = #tpu.dot_dimension_numbers<[1], [0], [0], [1], [0, 0, 1, 1], [], []>} : vector<16x32xf32>, vector<32x256xf32>, vector<16x256xf32> -> vector<16x256xf32>
    %c131 = arith.constant 131 : index
    %c0_14 = arith.constant 0 : index
    %26 = vector.load %arg1[%c131, %c0_14] : memref<136x256xf32, #tpu.memory_space<vmem>>, vector<1x256xf32>
    %27 = vector.broadcast %26 : vector<1x256xf32> to vector<16x256xf32>
    %28 = arith.addf %25, %27 : vector<16x256xf32>
    %cst_15 = arith.constant 0.000000e+00 : f32
    %29 = vector.broadcast %cst_15 : f32 to vector<16x256xf32>
    %30 = arith.maximumf %28, %29 : vector<16x256xf32>
    %31 = arith.truncf %30 : vector<16x256xf32> to vector<16x256xbf16>
    %c0_16 = arith.constant 0 : index
    %c0_17 = arith.constant 0 : index
    %c0_18 = arith.constant 0 : index
    %32 = vector.load %arg2[%c0_16, %c0_17, %c0_18] : memref<3x256x256xbf16, #tpu.memory_space<vmem>>, vector<1x256x256xbf16>
    %33 = vector.shape_cast %32 : vector<1x256x256xbf16> to vector<256x256xbf16>
    %cst_19 = arith.constant dense<0.000000e+00> : vector<16x256xf32>
    %34 = tpu.matmul %31, %33, %cst_19 {dimension_numbers = #tpu.dot_dimension_numbers<[1], [0], [0], [1], [0, 0, 1, 1], [], []>} : vector<16x256xbf16>, vector<256x256xbf16>, vector<16x256xf32> -> vector<16x256xf32>
    %c132 = arith.constant 132 : index
    %c0_20 = arith.constant 0 : index
    %35 = vector.load %arg1[%c132, %c0_20] : memref<136x256xf32, #tpu.memory_space<vmem>>, vector<1x256xf32>
    %36 = vector.broadcast %35 : vector<1x256xf32> to vector<16x256xf32>
    %37 = arith.addf %34, %36 : vector<16x256xf32>
    %cst_21 = arith.constant 0.000000e+00 : f32
    %38 = vector.broadcast %cst_21 : f32 to vector<16x256xf32>
    %39 = arith.maximumf %37, %38 : vector<16x256xf32>
    %40 = arith.truncf %39 : vector<16x256xf32> to vector<16x256xbf16>
    %c1 = arith.constant 1 : index
    %c0_22 = arith.constant 0 : index
    %c0_23 = arith.constant 0 : index
    %41 = vector.load %arg2[%c1, %c0_22, %c0_23] : memref<3x256x256xbf16, #tpu.memory_space<vmem>>, vector<1x256x256xbf16>
    %42 = vector.shape_cast %41 : vector<1x256x256xbf16> to vector<256x256xbf16>
    %cst_24 = arith.constant dense<0.000000e+00> : vector<16x256xf32>
    %43 = tpu.matmul %40, %42, %cst_24 {dimension_numbers = #tpu.dot_dimension_numbers<[1], [0], [0], [1], [0, 0, 1, 1], [], []>} : vector<16x256xbf16>, vector<256x256xbf16>, vector<16x256xf32> -> vector<16x256xf32>
    %c133 = arith.constant 133 : index
    %c0_25 = arith.constant 0 : index
    %44 = vector.load %arg1[%c133, %c0_25] : memref<136x256xf32, #tpu.memory_space<vmem>>, vector<1x256xf32>
    %45 = vector.broadcast %44 : vector<1x256xf32> to vector<16x256xf32>
    %46 = arith.addf %43, %45 : vector<16x256xf32>
    %cst_26 = arith.constant 0.000000e+00 : f32
    %47 = vector.broadcast %cst_26 : f32 to vector<16x256xf32>
    %48 = arith.maximumf %46, %47 : vector<16x256xf32>
    %49 = arith.truncf %48 : vector<16x256xf32> to vector<16x256xbf16>
    %c2 = arith.constant 2 : index
    %c0_27 = arith.constant 0 : index
    %c0_28 = arith.constant 0 : index
    %50 = vector.load %arg2[%c2, %c0_27, %c0_28] : memref<3x256x256xbf16, #tpu.memory_space<vmem>>, vector<1x256x256xbf16>
    %51 = vector.shape_cast %50 : vector<1x256x256xbf16> to vector<256x256xbf16>
    %cst_29 = arith.constant dense<0.000000e+00> : vector<16x256xf32>
    %52 = tpu.matmul %49, %51, %cst_29 {dimension_numbers = #tpu.dot_dimension_numbers<[1], [0], [0], [1], [0, 0, 1, 1], [], []>} : vector<16x256xbf16>, vector<256x256xbf16>, vector<16x256xf32> -> vector<16x256xf32>
    %c134 = arith.constant 134 : index
    %c0_30 = arith.constant 0 : index
    %53 = vector.load %arg1[%c134, %c0_30] : memref<136x256xf32, #tpu.memory_space<vmem>>, vector<1x256xf32>
    %54 = vector.broadcast %53 : vector<1x256xf32> to vector<16x256xf32>
    %55 = arith.addf %52, %54 : vector<16x256xf32>
    %c0_31 = arith.constant 0 : index
    %c0_32 = arith.constant 0 : index
    %56 = vector.load %arg3[%c0_31, %c0_32] : memref<16x256xf32, #tpu.memory_space<vmem>>, vector<16x256xf32>
    tpu.vector_store %arg3[%c0_31, %c0_32], %55 {strides = array<i32>} : memref<16x256xf32, #tpu.memory_space<vmem>>, vector<16x256xf32>,
    return
  }
}

</mosaic_0001>

<bundles_post_ra>
// kernel: tpu_custom_call.1
= control target key start
LH: loop header
LB: loop body
LE: loop exit
PB: predicated region body
PF: predicated region fallthrough
CT: control target
= control target key end

     0   :  { %8 = vsyncpa [#allocation3], 0  ;;  %s1720_s0 = inlined_call_operand.hbm [shape: f32[16,32], index: 0, kind: input, shape index: {}]   ;;  %s1721_s1 = inlined_call_operand.hbm [shape: f32[136,256], index: 1, kind: input, shape index: {}]   ;;  %s1722_s2 = inlined_call_operand.hbm [shape: bf16[3,256,256], index: 2, kind: input, shape index: {}]   ;;  %s1723_s3 = inlined_call_operand.hbm [shape: f32[16,256], index: 3, kind: output, shape index: {}]  }
   0x1   :  { %9 = vsyncpa [#allocation6], 0  ;;  %s28_s14 = sshll.u32 %s1721_s1, 4  ;;  %s29_s14 = int_to_ptr.hbm [resolvable:$true] %s28_s14 }
   0x2   :  { %10 = vsyncpa [#allocation4], 0  ;;  %s1656_s15 = smov [#allocation5]   ;;  %s15_s19 = sshll.u32 %s1720_s0, 4  ;;  %s16_s19 = int_to_ptr.hbm [resolvable:$true] %s15_s19 }
   0x3   :  { %s30_s16 = sshll.u32 %s1656_s15, 4  ;;  %s1657_s20 = smov 256   ;;  %s31_s16 = int_to_ptr.vmem [resolvable:$true] %s30_s16 }
   0x4   :  { %s1658_s21 = smov 16   ;;  %s1659_s22 = smov [#allocation2]  }
   0x5   :  { %36 = dma.hbm_to_vmem [thread:$0]  %s29_s14, 4352, %s31_s16, [#allocation6], %s1657_s20, %s1657_s20, %s1658_s21  }
   0x6   :  { %s17_s23 = sshll.u32 %s1659_s22, 4  ;;  %s1660_s1 = smov 128   ;;  %s18_s23 = int_to_ptr.vmem [resolvable:$true] %s17_s23 }
   0x7   :  { %s1661_s24 = smov 8   ;;  %s41_s27 = sshll.u32 %s1722_s2, 4  ;;  %s42_s27 = int_to_ptr.hbm [resolvable:$true] %s41_s27 }
   0x8   :  { %23 = dma.hbm_to_vmem [thread:$0]  %s16_s19, 256, %s18_s23, [#allocation3], %s1660_s1, %s1660_s1, %s1661_s24  }
   0x9   :  { %s1662_s28 = smov [#allocation7]  }
   0xa   :  { %s43_s0 = sshll.u32 %s1662_s28, 4  ;;  %s44_s0 = int_to_ptr.vmem [resolvable:$true] %s43_s0 }
   0xb   :  { %49 = dma.hbm_to_vmem [thread:$0]  %s42_s27, 12288, %s44_s0, [#allocation6], %s1660_s1, %s1660_s1, %s1661_s24  }
   0xc   :  { %1650 = dma.done.wait [#allocation3], 256  }
   0xd   :  { %1651 = vsyncadd [#allocation3], 4294967040 }
   0xe   :  { %1652 = dma.done.wait [#allocation6], 16640  }
   0xf   :  { %1653 = vsyncadd [#allocation6], 4294950656  ;;  %v67_v0 = vld [vmem:[#allocation5 + $0x30] sm:$0xff]  ;;  %v66_v1 = vld [vmem:[#allocation5 + $0x20] sm:$0xff]  ;;  %vm69_vm0 = vcmask 261120   ;;  %s1663_s2 = smov [#allocation8]  }
  0x10   :  { %88 = vmatpush.msra.mxu0 %v67_v0  ;;  %1542 = vmatpush.msra.mxu1 %v67_v0  ;;  %v65_v2 = vld [vmem:[#allocation5 + $0x10] sm:$0xff]  ;;  %v64_v3 = vld [vmem:[#allocation5] sm:$0xff]  ;;  %v1698_v5 = vld [vmem:[#allocation2 + $0x8] sm:$0xff]  ;;  %s1036_s29 = sshll.u32 %s1663_s2, 4  ;;  %s1038_s5 = sshll.u32 %s1723_s3, 4  ;;  %s1037_s29 = int_to_ptr.vmem [resolvable:$true] %s1036_s29  ;;  %s1039_s5 = int_to_ptr.hbm [resolvable:$true] %s1038_s5 }
  0x11   :  { %v1696_v4 = vld [vmem:[#allocation2] sm:$0xff]  ;;  %v103_v7 = vld [vmem:[#allocation5 + $0x60] sm:$0xff]  ;;  %v183_v22 = vld [vmem:[#allocation5 + $0xf8] sm:$0xff] }
  0x12   :  { %89 = vmatpush.msra.mxu0 %v66_v1  ;;  %1543 = vmatpush.msra.mxu1 %v66_v1  ;;  %v104_v6 = vld [vmem:[#allocation5 + $0x70] sm:$0xff]  ;;  %v101_v9 = vld [vmem:[#allocation5 + $0x40] sm:$0xff]  ;;  %v181_v24 = vld [vmem:[#allocation5 + $0xe8] sm:$0xff] }
  0x13   :  { %v102_v8 = vld [vmem:[#allocation5 + $0x50] sm:$0xff]  ;;  %v68_v11 = vld [vmem:[#allocation5 + $0x100] ss:$0 sm:$0xff]  ;;  %v105_v25 = vld [vmem:[#allocation5 + $0x101] ss:$0 sm:$0xff] }
  0x14   :  { %90 = vmatpush.msra.mxu0 %v65_v2  ;;  %1544 = vmatpush.msra.mxu1 %v65_v2  ;;  %v140_v10 = vld [vmem:[#allocation5 + $0xb0] sm:$0xff]  ;;  %v139_v18 = vld [vmem:[#allocation5 + $0xa0] sm:$0xff]  ;;  %v179_v33 = vld [vmem:[#allocation5 + $0xd8] sm:$0xff] }
  0x15   :  { %160 = vmatpush.msra.mxu2 %v140_v10  ;;  %v138_v19 = vld [vmem:[#allocation5 + $0x90] sm:$0xff]  ;;  %v137_v20 = vld [vmem:[#allocation5 + $0x80] sm:$0xff]  ;;  %v177_v35 = vld [vmem:[#allocation5 + $0xc8] sm:$0xff] }
  0x16   :  { %91 = vmatpush.msra.mxu0 %v64_v3  ;;  %1545 = vmatpush.msra.mxu1 %v64_v3  ;;  %v182_v21 = vld [vmem:[#allocation5 + $0xf0] sm:$0xff]  ;;  %v180_v23 = vld [vmem:[#allocation5 + $0xe0] sm:$0xff]  ;;  %v1477_v37 = vld [vmem:[#allocation7 + $0xf4] sm:$0xf0] }
  0x17   :  { %1052 = vmatmul.msk.f32.vlgmr.msra.gmra.mxu0 %vm69_vm0, %v1696_v4  ;;  %1053 = vmatmul.msk.f32.vlgmr.msra.gmra.mxu1 %vm69_vm0, %v1698_v5  ;;  %v178_v32 = vld [vmem:[#allocation5 + $0xd0] sm:$0xff]  ;;  %v176_v34 = vld [vmem:[#allocation5 + $0xc0] sm:$0xff]  ;;  %v1186_v40 = vld [vmem:[#allocation7 + $0xf8] sm:$0xf0] }
  0x18   :  { %124 = vmatpush.msrb.mxu1 %v104_v6  ;;  %161 = vmatpush.msra.mxu2 %v139_v18  ;;  %v1184_v36 = vld [vmem:[#allocation7 + $0xf0] sm:$0xf]  ;;  %v1476_v38 = vld [vmem:[#allocation7 + $0xf4] sm:$0xf]  ;;  %v1176_v41 = vld [vmem:[#allocation7 + $0xe0] sm:$0xf] }
  0x19   :  { %209 = vmatpush.msra.mxu3 %v182_v21  ;;  %232 = vmatpush.msrb.mxu0 %v183_v22  ;;  %v1185_v39 = vor.u32 %v1477_v37, %v1184_v36  ;;  %v1475_v42 = vld [vmem:[#allocation7 + $0xe4] sm:$0xf0]  ;;  %v1189_v43 = vor.u32 %v1476_v38, %v1186_v40  ;;  %v1474_v44 = vld [vmem:[#allocation7 + $0xe4] sm:$0xf]  ;;  %v1178_v45 = vld [vmem:[#allocation7 + $0xe8] sm:$0xf0] }
  0x1a   :  { %125 = vmatpush.msrb.mxu1 %v103_v7  ;;  %162 = vmatpush.msra.mxu2 %v138_v19  ;;  %v1120_v46 = vld [vmem:[#allocation7 + $0x70] sm:$0xf]  ;;  %v1177_v47 = vor.u32 %v1475_v42, %v1176_v41  ;;  %v1461_v48 = vld [vmem:[#allocation7 + $0x74] sm:$0xf0]  ;;  %v1460_v49 = vld [vmem:[#allocation7 + $0x74] sm:$0xf]  ;;  %v1181_v51 = vor.u32 %v1474_v44, %v1178_v45 }
  0x1b   :  { %210 = vmatpush.msra.mxu3 %v180_v23  ;;  %233 = vmatpush.msrb.mxu0 %v181_v24  ;;  %v1122_v50 = vld [vmem:[#allocation7 + $0x78] sm:$0xf0]  ;;  %v1121_v52 = vor.u32 %v1461_v48, %v1120_v46  ;;  %v1168_v54 = vld [vmem:[#allocation7 + $0xd0] sm:$0xf]  ;;  %v1473_v55 = vld [vmem:[#allocation7 + $0xd4] sm:$0xf0] }
  0x1c   :  { %126 = vmatpush.msrb.mxu1 %v102_v8  ;;  %163 = vmatpush.msra.mxu2 %v137_v20  ;;  %v1125_v53 = vor.u32 %v1460_v49, %v1122_v50  ;;  %v1472_v56 = vld [vmem:[#allocation7 + $0xd4] sm:$0xf]  ;;  %v1170_v57 = vld [vmem:[#allocation7 + $0xd8] sm:$0xf0]  ;;  %v1112_v58 = vld [vmem:[#allocation7 + $0x60] sm:$0xf]  ;;  %v1169_v63 = vor.u32 %v1473_v55, %v1168_v54 }
  0x1d   :  { %211 = vmatpush.msra.mxu3 %v178_v32  ;;  %234 = vmatpush.msrb.mxu0 %v179_v33  ;;  %v1459_v59 = vld [vmem:[#allocation7 + $0x64] sm:$0xf0]  ;;  %v1458_v61 = vld [vmem:[#allocation7 + $0x64] sm:$0xf]  ;;  %v1114_v62 = vld [vmem:[#allocation7 + $0x68] sm:$0xf0]  ;;  %v1173_v3 = vor.u32 %v1472_v56, %v1170_v57 }
  0x1e   :  { %127 = vmatpush.msrb.mxu1 %v101_v9  ;;  %462 = vmatpush.bf16.msrb.mxu2 %v1185_v39  ;;  %v1113_v60 = vor.u32 %v1459_v59, %v1112_v58  ;;  %v1117_v0 = vor.u32 %v1458_v61, %v1114_v62  ;;  %v1160_v1 = vld [vmem:[#allocation7 + $0xc0] sm:$0xf]  ;;  %v1471_v2 = vld [vmem:[#allocation7 + $0xc4] sm:$0xf0]  ;;  %v1104_v6 = vld [vmem:[#allocation7 + $0x50] sm:$0xf] }
  0x1f   :  { %212 = vmatpush.msra.mxu3 %v176_v34  ;;  %235 = vmatpush.msrb.mxu0 %v177_v35  ;;  %v1457_v7 = vld [vmem:[#allocation7 + $0x54] sm:$0xf0]  ;;  %v1456_v8 = vld [vmem:[#allocation7 + $0x54] sm:$0xf]  ;;  %v1470_v9 = vld [vmem:[#allocation7 + $0xc4] sm:$0xf] }
  0x20   :  { %448 = vmatpush.bf16.msra.mxu1 %v1121_v52  ;;  %v1162_v10 = vld [vmem:[#allocation7 + $0xc8] sm:$0xf0]  ;;  %v141_v18 = vld [vmem:[#allocation5 + $0x102] ss:$0 sm:$0xff]  ;;  %v1454_v32 = vld [vmem:[#allocation7 + $0x44] sm:$0xf] }
  0x21   :  { %490 = vmatpush.bf16.msra.mxu0 %v1189_v43  ;;  %476 = vmatpush.bf16.msrb.mxu3 %v1125_v53  ;;  %v1098_v34 = vld [vmem:[#allocation7 + $0x48] sm:$0xf0]  ;;  %v1144_v36 = vld [vmem:[#allocation7 + $0xa0] sm:$0xf]  ;;  %v1466_v37 = vld [vmem:[#allocation7 + $0xa4] sm:$0xf] }
  0x22   :  { %463 = vmatpush.bf16.msrb.mxu2 %v1177_v47  ;;  %v1101_v35 = vor.u32 %v1454_v32, %v1098_v34  ;;  %v1146_v39 = vld [vmem:[#allocation7 + $0xa8] sm:$0xf0]  ;;  %v1088_v41 = vld [vmem:[#allocation7 + $0x30] sm:$0xf]  ;;  %v1453_v42 = vld [vmem:[#allocation7 + $0x34] sm:$0xf0] }
  0x23   :  { %v1149_v40 = vor.u32 %v1466_v37, %v1146_v39  ;;  %v1089_v43 = vor.u32 %v1453_v42, %v1088_v41  ;;  %v1452_v44 = vld [vmem:[#allocation7 + $0x34] sm:$0xf]  ;;  %v1090_v45 = vld [vmem:[#allocation7 + $0x38] sm:$0xf0]  ;;  %v1136_v47 = vld [vmem:[#allocation7 + $0x90] sm:$0xf] }
  0x24   :  { %449 = vmatpush.bf16.msra.mxu1 %v1113_v60  ;;  %v1093_v46 = vor.u32 %v1452_v44, %v1090_v45  ;;  %v1465_v48 = vld [vmem:[#allocation7 + $0x94] sm:$0xf0]  ;;  %v1464_v49 = vld [vmem:[#allocation7 + $0x94] sm:$0xf]  ;;  %v1080_v53 = vld [vmem:[#allocation7 + $0x20] sm:$0xf] }
  0x25   :  { %491 = vmatpush.bf16.msra.mxu0 %v1181_v51  ;;  %477 = vmatpush.bf16.msrb.mxu3 %v1117_v0  ;;  %v1137_v50 = vor.u32 %v1465_v48, %v1136_v47  ;;  %v1138_v51 = vld [vmem:[#allocation7 + $0x98] sm:$0xf0]  ;;  %v1451_v54 = vld [vmem:[#allocation7 + $0x24] sm:$0xf0]  ;;  %v1450_v55 = vld [vmem:[#allocation7 + $0x24] sm:$0xf] }
  0x26   :  { %464 = vmatpush.bf16.msrb.mxu2 %v1169_v63  ;;  %v1141_v52 = vor.u32 %v1464_v49, %v1138_v51  ;;  %v1081_v56 = vor.u32 %v1451_v54, %v1080_v53  ;;  %v1082_v57 = vld [vmem:[#allocation7 + $0x28] sm:$0xf0]  ;;  %v1128_v59 = vld [vmem:[#allocation7 + $0x80] sm:$0xf]  ;;  %v1463_v60 = vld [vmem:[#allocation7 + $0x84] sm:$0xf0] }
  0x27   :  { %v1085_v58 = vor.u32 %v1450_v55, %v1082_v57  ;;  %v1462_v61 = vld [vmem:[#allocation7 + $0x84] sm:$0xf]  ;;  %v1129_v62 = vor.u32 %v1463_v60, %v1128_v59  ;;  %v1130_v63 = vld [vmem:[#allocation7 + $0x88] sm:$0xf0]  ;;  %v1232_v48 = vld [vmem:[#allocation7 + $0x150] sm:$0xf] }
  0x28   :  { %v1133_v0 = vor.u32 %v1462_v61, %v1130_v63  ;;  %v185_v32 = vld [vmem:[#allocation5 + $0x103] ss:$8 sm:$0x3]  ;;  %v1304_v54 = vld [vmem:[#allocation7 + $0x1e0] sm:$0xf] }
  0x29   :  { %492 = vmatpush.bf16.msra.mxu0 %v1173_v3  ;;  %v1448_v3 = vld [vmem:[#allocation7 + $0x14] sm:$0xf]  ;;  %v188_v34 = vperm.slane %v185_v32, 1  ;;  %v187_v37 = vperm.slane %v185_v32, 0  ;;  %v1489_v49 = vld [vmem:[#allocation7 + $0x154] sm:$0xf0] }
  0x2a   :  { %v1233_v51 = vor.u32 %v1489_v49, %v1232_v48  ;;  %v1507_v55 = vld [vmem:[#allocation7 + $0x1e4] sm:$0xf0]  ;;  %v1224_v59 = vld [vmem:[#allocation7 + $0x140] sm:$0xf]  ;;  %v1486_v63 = vld [vmem:[#allocation7 + $0x144] sm:$0xf] }
  0x2b   :  { %v1305_v57 = vor.u32 %v1507_v55, %v1304_v54  ;;  %v1487_v60 = vld [vmem:[#allocation7 + $0x144] sm:$0xf0]  ;;  %v1194_v48 = vld [vmem:[#allocation7 + $0x108] sm:$0xf0]  ;;  %v1266_v54 = vld [vmem:[#allocation7 + $0x198] sm:$0xf0] }
  0x94   :  { %v93_v12 = vpop.f32.mrf.mxu0  ;;  %v96_v14 = vpop.f32.mrf.mxu1 }
  0x95   :  { %v94_v13 = vadd.f32 %v93_v12, %v68_v11  ;;  %v97_v16 = vadd.f32 %v96_v14, %v68_v11  ;;  %v1106_v11 = vld [vmem:[#allocation7 + $0x58] sm:$0xf0]  ;;  %v1105_v12 = vor.u32 %v1457_v7, %v1104_v6  ;;  %v1161_v14 = vor.u32 %v1471_v2, %v1160_v1  ;;  %v1072_v1 = vld [vmem:[#allocation7 + $0x10] sm:$0xf]  ;;  %v1449_v2 = vld [vmem:[#allocation7 + $0x14] sm:$0xf0] }
  0x96   :  { %v1073_v6 = vor.u32 %v1449_v2, %v1072_v1  ;;  %v1074_v7 = vld [vmem:[#allocation7 + $0x18] sm:$0xf0]  ;;  %v1296_v2 = vld [vmem:[#allocation7 + $0x1d0] sm:$0xf] }
  0x97   :  { %v99_v15 = vmax.f32 %v94_v13, 0.0  ;;  %v100_v17 = vmax.f32 %v97_v16, 0.0  ;;  %v1109_v13 = vor.u32 %v1456_v8, %v1106_v11  ;;  %v1165_v16 = vor.u32 %v1470_v9, %v1162_v10  ;;  %450 = vmatpush.bf16.msra.mxu1 %v1105_v12  ;;  %465 = vmatpush.bf16.msrb.mxu2 %v1161_v14  ;;  %v1064_v9 = vld [vmem:[#allocation7] sm:$0xf]  ;;  %v1447_v10 = vld [vmem:[#allocation7 + $0x4] sm:$0xf0] }
  0x98   :  { %v1077_v8 = vor.u32 %v1448_v3, %v1074_v7  ;;  %v1446_v11 = vld [vmem:[#allocation7 + $0x4] sm:$0xf]  ;;  %v1065_v12 = vor.u32 %v1447_v10, %v1064_v9  ;;  %v1505_v3 = vld [vmem:[#allocation7 + $0x1d4] sm:$0xf0]  ;;  %v1504_v7 = vld [vmem:[#allocation7 + $0x1d4] sm:$0xf] }
  0x99   :  { %1054 = vmatmul.msk.f32.vlgmr.msrb.gmra.mxu1 %vm69_vm0, %v99_v15  ;;  %v171_v15 = vlaneseq  ;;  %478 = vmatpush.bf16.msrb.mxu3 %v1109_v13  ;;  %v1066_v13 = vld [vmem:[#allocation7 + $0x8] sm:$0xf0]  ;;  %v1216_v10 = vld [vmem:[#allocation7 + $0x130] sm:$0xf] }
  0x9a   :  { %493 = vmatpush.bf16.msra.mxu0 %v1165_v16  ;;  %v1069_v14 = vor.u32 %v1446_v11, %v1066_v13  ;;  %v1493_v16 = vld [vmem:[#allocation7 + $0x174] sm:$0xf0] }
  0x9b   :  { %v1485_v11 = vld [vmem:[#allocation7 + $0x134] sm:$0xf0] }
  0x9c   :  { %v1217_v13 = vor.u32 %v1485_v11, %v1216_v10  ;;  %v1539_v10 = vld [vmem:[#allocation7 + $0x2e4] sm:$0xf0]  ;;  %v1524_v11 = vld [vmem:[#allocation7 + $0x274] sm:$0xf] }
  0x9d   :  { %479 = vmatpush.bf16.msrb.mxu3 %v1101_v35 }
  0xa1   :  { %1055 = vmatmul.msk.f32.gmra.mxu1 %vm69_vm0, %v100_v17  ;;  %v172_v17 = vand.u32 127, %v171_v15  ;;  %480 = vmatpush.bf16.msrb.mxu3 %v1093_v46  ;;  %v1248_v15 = vld [vmem:[#allocation7 + $0x170] sm:$0xf] }
  0xa3   :  { %vm173_vm1 = vcmp.lt.s32.totalorder %v172_v17, 8  ;;  %v1492_v17 = vld [vmem:[#allocation7 + $0x174] sm:$0xf] }
  0xa5   :  { %481 = vmatpush.bf16.msrb.mxu3 %v1085_v58  ;;  %v1306_v58 = vld [vmem:[#allocation7 + $0x1e8] sm:$0xf0] }
  0xa9   :  { %482 = vmatpush.bf16.msrb.mxu3 %v1077_v8  ;;  %v1298_v8 = vld [vmem:[#allocation7 + $0x1d8] sm:$0xf0] }
  0xaa   :  { %v1301_v9 = vor.u32 %v1504_v7, %v1298_v8 }
  0xad   :  { %483 = vmatpush.bf16.msrb.mxu3 %v1069_v14  ;;  %v1218_v14 = vld [vmem:[#allocation7 + $0x138] sm:$0xf0] }
 0x116   :  { %v129_v26 = vpop.f32.mrf.mxu1 }
 0x117   :  { %v130_v27 = vadd.f32 %v129_v26, %v105_v25  ;;  %v1469_v26 = vld [vmem:[#allocation7 + $0xb4] sm:$0xf0] }
 0x119   :  { %v135_v28 = vmax.f32 %v130_v27, 0.0  ;;  %v1468_v27 = vld [vmem:[#allocation7 + $0xb4] sm:$0xf] }
 0x11b   :  { %1056 = vmatmul.msk.f32.vlgmr.msra.gmra.mxu2 %vm69_vm0, %v135_v28 }
 0x11e   :  { %v132_v29 = vpop.f32.mrf.mxu1 }
 0x11f   :  { %v133_v30 = vadd.f32 %v132_v29, %v105_v25  ;;  %v1152_v25 = vld [vmem:[#allocation7 + $0xb0] sm:$0xf]  ;;  %v1154_v29 = vld [vmem:[#allocation7 + $0xb8] sm:$0xf0] }
 0x120   :  { %v1153_v28 = vor.u32 %v1469_v26, %v1152_v25  ;;  %v1312_v25 = vld [vmem:[#allocation7 + $0x1f0] sm:$0xf] }
 0x121   :  { %v136_v31 = vmax.f32 %v133_v30, 0.0  ;;  %v1157_v30 = vor.u32 %v1468_v27, %v1154_v29  ;;  %v1509_v27 = vld [vmem:[#allocation7 + $0x1f4] sm:$0xf0]  ;;  %v1314_v29 = vld [vmem:[#allocation7 + $0x1f8] sm:$0xf0] }
 0x122   :  { %466 = vmatpush.bf16.msrb.mxu2 %v1153_v28  ;;  %v1508_v28 = vld [vmem:[#allocation7 + $0x1f4] sm:$0xf] }
 0x123   :  { %1057 = vmatmul.msk.f32.gmra.mxu2 %vm69_vm0, %v136_v31  ;;  %v1096_v31 = vld [vmem:[#allocation7 + $0x40] sm:$0xf]  ;;  %494 = vmatpush.bf16.msra.mxu0 %v1157_v30 }
 0x127   :  { %495 = vmatpush.bf16.msra.mxu0 %v1149_v40 }
 0x12b   :  { %496 = vmatpush.bf16.msra.mxu0 %v1141_v52  ;;  %v1234_v52 = vld [vmem:[#allocation7 + $0x158] sm:$0xf0] }
 0x12f   :  { %497 = vmatpush.bf16.msra.mxu0 %v1133_v0  ;;  %v1226_v0 = vld [vmem:[#allocation7 + $0x148] sm:$0xf0] }
 0x130   :  { %v1229_v1 = vor.u32 %v1486_v63, %v1226_v0  ;;  %v1541_v63 = vld [vmem:[#allocation7 + $0x2f4] sm:$0xf0]  ;;  %v1540_v0 = vld [vmem:[#allocation7 + $0x2f4] sm:$0xf] }
 0x19e   :  { %v165_v19 = vpop.f32.mrf.mxu2 }
 0x19f   :  { %v166_v20 = vadd.f32 %v165_v19, %v141_v18  ;;  %v1250_v19 = vld [vmem:[#allocation7 + $0x178] sm:$0xf0] }
 0x1a1   :  { %v174_v21 = vsel %vm173_vm1, %v1696_v4, %v166_v20  ;;  %v1455_v4 = vld [vmem:[#allocation7 + $0x44] sm:$0xf0]  ;;  %v1240_v20 = vld [vmem:[#allocation7 + $0x160] sm:$0xf] }
 0x1a2   :  { %1058 = vmatmul.msk.f32.vlgmr.msra.gmra.mxu3 %vm69_vm0, %v174_v21  ;;  %1060 = vmatmul.msk.f32.vlgmr.msrb.gmra.mxu0 %vm69_vm0, %v174_v21  ;;  %v1097_v33 = vor.u32 %v1455_v4, %v1096_v31  ;;  %v1491_v21 = vld [vmem:[#allocation7 + $0x164] sm:$0xf0]  ;;  %v1313_v31 = vor.u32 %v1509_v27, %v1312_v25  ;;  %v1317_v4 = vor.u32 %v1508_v28, %v1314_v29  ;;  %v1280_v28 = vld [vmem:[#allocation7 + $0x1b0] sm:$0xf]  ;;  %v1501_v29 = vld [vmem:[#allocation7 + $0x1b4] sm:$0xf0] }
 0x1a3   :  { %v1241_v26 = vor.u32 %v1491_v21, %v1240_v20  ;;  %v1290_v20 = vld [vmem:[#allocation7 + $0x1c8] sm:$0xf0] }
 0x1a4   :  { %451 = vmatpush.bf16.msra.mxu1 %v1097_v33  ;;  %752 = vmatpush.bf16.msrb.mxu0 %v1317_v4  ;;  %v1282_v4 = vld [vmem:[#allocation7 + $0x1b8] sm:$0xf0] }
 0x1a6   :  { %v168_v22 = vpop.f32.mrf.mxu2 }
 0x1a7   :  { %v169_v23 = vadd.f32 %v168_v22, %v141_v18  ;;  %v1249_v18 = vor.u32 %v1493_v16, %v1248_v15  ;;  %v1253_v22 = vor.u32 %v1492_v17, %v1250_v19  ;;  %v1288_v16 = vld [vmem:[#allocation7 + $0x1c0] sm:$0xf]  ;;  %v1503_v17 = vld [vmem:[#allocation7 + $0x1c4] sm:$0xf0] }
 0x1a8   :  { %452 = vmatpush.bf16.msra.mxu1 %v1089_v43  ;;  %v1289_v19 = vor.u32 %v1503_v17, %v1288_v16 }
 0x1a9   :  { %v175_v24 = vsel %vm173_vm1, %v1698_v5, %v169_v23  ;;  %v1467_v5 = vld [vmem:[#allocation7 + $0xa4] sm:$0xf0]  ;;  %v1490_v23 = vld [vmem:[#allocation7 + $0x164] sm:$0xf]  ;;  %738 = vmatpush.bf16.msra.mxu3 %v1253_v22  ;;  %v1208_v22 = vld [vmem:[#allocation7 + $0x120] sm:$0xf] }
 0x1aa   :  { %1059 = vmatmul.msk.f32.gmra.mxu3 %vm69_vm0, %v175_v24  ;;  %1061 = vmatmul.msk.f32.gmra.mxu0 %vm69_vm0, %v175_v24  ;;  %v1145_v38 = vor.u32 %v1467_v5, %v1144_v36  ;;  %v1242_v24 = vld [vmem:[#allocation7 + $0x168] sm:$0xf0] }
 0x1ab   :  { %v1245_v30 = vor.u32 %v1490_v23, %v1242_v24  ;;  %v1483_v23 = vld [vmem:[#allocation7 + $0x124] sm:$0xf0]  ;;  %v1482_v24 = vld [vmem:[#allocation7 + $0x124] sm:$0xf] }
 0x1ac   :  { %467 = vmatpush.bf16.msrb.mxu2 %v1145_v38  ;;  %453 = vmatpush.bf16.msra.mxu1 %v1081_v56  ;;  %v1506_v56 = vld [vmem:[#allocation7 + $0x1e4] sm:$0xf]  ;;  %v1209_v25 = vor.u32 %v1483_v23, %v1208_v22 }
 0x1ad   :  { %739 = vmatpush.bf16.msra.mxu3 %v1245_v30  ;;  %v1309_v61 = vor.u32 %v1506_v56, %v1306_v58  ;;  %v1281_v30 = vor.u32 %v1501_v29, %v1280_v28  ;;  %v1256_v56 = vld [vmem:[#allocation7 + $0x180] sm:$0xf]  ;;  %v1494_v58 = vld [vmem:[#allocation7 + $0x184] sm:$0xf] }
 0x1af   :  { %753 = vmatpush.bf16.msrb.mxu0 %v1309_v61 }
 0x1b0   :  { %468 = vmatpush.bf16.msrb.mxu2 %v1137_v50  ;;  %454 = vmatpush.bf16.msra.mxu1 %v1073_v6  ;;  %v1488_v50 = vld [vmem:[#allocation7 + $0x154] sm:$0xf]  ;;  %v1297_v6 = vor.u32 %v1505_v3, %v1296_v2  ;;  %v1442_v2 = vld [vmem:[#allocation7 + $0x2f8] sm:$0xf0]  ;;  %v1376_v3 = vld [vmem:[#allocation7 + $0x270] sm:$0xf] }
 0x1b1   :  { %v1237_v53 = vor.u32 %v1488_v50, %v1234_v52  ;;  %v1264_v50 = vld [vmem:[#allocation7 + $0x190] sm:$0xf]  ;;  %v1496_v52 = vld [vmem:[#allocation7 + $0x194] sm:$0xf]  ;;  %v1445_v7 = vor.u32 %v1540_v0, %v1442_v2  ;;  %v1519_v2 = vld [vmem:[#allocation7 + $0x244] sm:$0xf0] }
 0x1b2   :  { %v1269_v55 = vor.u32 %v1496_v52, %v1266_v54  ;;  %v1521_v54 = vld [vmem:[#allocation7 + $0x254] sm:$0xf0] }
 0x1b3   :  { %740 = vmatpush.bf16.msra.mxu3 %v1237_v53  ;;  %754 = vmatpush.bf16.msrb.mxu0 %v1301_v9  ;;  %v1432_v9 = vld [vmem:[#allocation7 + $0x2e0] sm:$0xf] }
 0x1b4   :  { %469 = vmatpush.bf16.msrb.mxu2 %v1129_v62  ;;  %455 = vmatpush.bf16.msra.mxu1 %v1065_v12  ;;  %v1225_v62 = vor.u32 %v1487_v60, %v1224_v59  ;;  %v1484_v12 = vld [vmem:[#allocation7 + $0x134] sm:$0xf]  ;;  %v1258_v60 = vld [vmem:[#allocation7 + $0x188] sm:$0xf0] }
 0x1b5   :  { %v1221_v15 = vor.u32 %v1484_v12, %v1218_v14  ;;  %v1261_v61 = vor.u32 %v1494_v58, %v1258_v60  ;;  %v1433_v12 = vor.u32 %v1539_v10, %v1432_v9  ;;  %v1538_v14 = vld [vmem:[#allocation7 + $0x2e4] sm:$0xf]  ;;  %v1520_v58 = vld [vmem:[#allocation7 + $0x254] sm:$0xf]  ;;  %v1354_v9 = vld [vmem:[#allocation7 + $0x248] sm:$0xf0] }
 0x1b7   :  { %741 = vmatpush.bf16.msra.mxu3 %v1229_v1 }
 0x1b8   :  { %710 = vmatpush.bf16.msrb.mxu1 %v1249_v18  ;;  %724 = vmatpush.bf16.msra.mxu2 %v1313_v31  ;;  %v1502_v18 = vld [vmem:[#allocation7 + $0x1c4] sm:$0xf]  ;;  %v1500_v31 = vld [vmem:[#allocation7 + $0x1b4] sm:$0xf] }
 0x1b9   :  { %v1293_v21 = vor.u32 %v1502_v18, %v1290_v20  ;;  %v1285_v32 = vor.u32 %v1500_v31, %v1282_v4  ;;  %v282_v18 = vld [vmem:[#allocation5 + $0x104] ss:$8 sm:$0x3] }
 0x1bb   :  { %742 = vmatpush.bf16.msra.mxu3 %v1221_v15  ;;  %755 = vmatpush.bf16.msrb.mxu0 %v1293_v21  ;;  %v1434_v15 = vld [vmem:[#allocation7 + $0x2e8] sm:$0xf0]  ;;  %v284_v21 = vperm.slane %v282_v18, 0 }
 0x1bc   :  { %711 = vmatpush.bf16.msrb.mxu1 %v1241_v26  ;;  %725 = vmatpush.bf16.msra.mxu2 %v1305_v57  ;;  %v1210_v26 = vld [vmem:[#allocation7 + $0x128] sm:$0xf0]  ;;  %v1495_v57 = vld [vmem:[#allocation7 + $0x184] sm:$0xf0]  ;;  %v1437_v17 = vor.u32 %v1538_v14, %v1434_v15  ;;  %v1344_v15 = vld [vmem:[#allocation7 + $0x230] sm:$0xf] }
 0x1bd   :  { %v1213_v27 = vor.u32 %v1482_v24, %v1210_v26  ;;  %v1257_v59 = vor.u32 %v1495_v57, %v1256_v56  ;;  %v1535_v57 = vld [vmem:[#allocation7 + $0x2c4] sm:$0xf0] }
 0x1bf   :  { %743 = vmatpush.bf16.msra.mxu3 %v1213_v27  ;;  %756 = vmatpush.bf16.msrb.mxu0 %v1285_v32 }
 0x1c0   :  { %712 = vmatpush.bf16.msrb.mxu1 %v1233_v51  ;;  %726 = vmatpush.bf16.msra.mxu2 %v1297_v6  ;;  %v1497_v51 = vld [vmem:[#allocation7 + $0x194] sm:$0xf0] }
 0x1c1   :  { %v1265_v53 = vor.u32 %v1497_v51, %v1264_v50  ;;  %v1525_v6 = vld [vmem:[#allocation7 + $0x274] sm:$0xf0]  ;;  %v1536_v50 = vld [vmem:[#allocation7 + $0x2d4] sm:$0xf]  ;;  %v1426_v51 = vld [vmem:[#allocation7 + $0x2d8] sm:$0xf0] }
 0x1c2   :  { %v1377_v8 = vor.u32 %v1525_v6, %v1376_v3  ;;  %v1429_v52 = vor.u32 %v1536_v50, %v1426_v51  ;;  %v1408_v3 = vld [vmem:[#allocation7 + $0x2b0] sm:$0xf]  ;;  %v1511_v50 = vld [vmem:[#allocation7 + $0x204] sm:$0xf0]  ;;  %v1510_v51 = vld [vmem:[#allocation7 + $0x204] sm:$0xf] }
 0x1c4   :  { %713 = vmatpush.bf16.msrb.mxu1 %v1225_v62  ;;  %727 = vmatpush.bf16.msra.mxu2 %v1289_v19  ;;  %v1440_v62 = vld [vmem:[#allocation7 + $0x2f0] sm:$0xf] }
 0x1c5   :  { %v1441_v1 = vor.u32 %v1541_v63, %v1440_v62  ;;  %v1534_v62 = vld [vmem:[#allocation7 + $0x2c4] sm:$0xf]  ;;  %v1418_v63 = vld [vmem:[#allocation7 + $0x2c8] sm:$0xf0] }
 0x1c6   :  { %v1421_v0 = vor.u32 %v1534_v62, %v1418_v63 }
 0x1c8   :  { %714 = vmatpush.bf16.msrb.mxu1 %v1217_v13  ;;  %728 = vmatpush.bf16.msra.mxu2 %v1281_v30  ;;  %v1378_v13 = vld [vmem:[#allocation7 + $0x278] sm:$0xf0] }
 0x1c9   :  { %v1381_v16 = vor.u32 %v1524_v11, %v1378_v13  ;;  %v1410_v13 = vld [vmem:[#allocation7 + $0x2b8] sm:$0xf0] }
 0x1cc   :  { %715 = vmatpush.bf16.msrb.mxu1 %v1209_v25  ;;  %v285_v25 = vperm.slane %v282_v18, 1 }
 0x21f   :  { %v237_v33 = vpop.f32.mrf.mxu0 }
 0x220   :  { %v238_v36 = vadd.f32 %v237_v33, %v188_v34  ;;  %v1200_v33 = vld [vmem:[#allocation7 + $0x110] sm:$0xf] }
 0x222   :  { %v244_v39 = vmax.f32 %v238_v36, 0.0 }
 0x225   :  { %v214_v35 = vpop.f32.mrf.mxu3 }
 0x226   :  { %v215_v41 = vadd.f32 %v214_v35, %v187_v37  ;;  %v1480_v35 = vld [vmem:[#allocation7 + $0x114] sm:$0xf] }
 0x227   :  { %v240_v5 = vpop.f32.mrf.mxu0 }
 0x228   :  { %v241_v38 = vadd.f32 %v240_v5, %v188_v34  ;;  %v243_v45 = vmax.f32 %v215_v41, 0.0  ;;  %v1481_v34 = vld [vmem:[#allocation7 + $0x114] sm:$0xf0]  ;;  %v1202_v5 = vld [vmem:[#allocation7 + $0x118] sm:$0xf0] }
 0x229   :  { %v1201_v36 = vor.u32 %v1481_v34, %v1200_v33 }
 0x22a   :  { %v246_v40 = vmax.f32 %v241_v38, 0.0  ;;  %v1272_v38 = vld [vmem:[#allocation7 + $0x1a0] sm:$0xf] }
 0x22b   :  { %716 = vmatpush.bf16.msrb.mxu1 %v1201_v36 }
 0x22c   :  { %v248_v42 = vpack.c.bf16 %v246_v40, %v244_v39  ;;  %v1499_v39 = vld [vmem:[#allocation7 + $0x1a4] sm:$0xf0]  ;;  %v1498_v40 = vld [vmem:[#allocation7 + $0x1a4] sm:$0xf] }
 0x22d   :  { %v217_v43 = vpop.f32.mrf.mxu3  ;;  %v1273_v41 = vor.u32 %v1499_v39, %v1272_v38 }
 0x22e   :  { %v218_v44 = vadd.f32 %v217_v43, %v187_v37  ;;  %470 = vmatmul.bf16.vlgmr.msrb.gmra.mxu2 %v248_v42  ;;  %498 = vmatmul.bf16.vlgmr.msra.gmra.mxu0 %v248_v42  ;;  %v1205_v37 = vor.u32 %v1480_v35, %v1202_v5  ;;  %v1274_v42 = vld [vmem:[#allocation7 + $0x1a8] sm:$0xf0] }
 0x22f   :  { %v1277_v43 = vor.u32 %v1498_v40, %v1274_v42  ;;  %729 = vmatpush.bf16.msra.mxu2 %v1273_v41  ;;  %v1368_v41 = vld [vmem:[#allocation7 + $0x260] sm:$0xf]  ;;  %v1523_v42 = vld [vmem:[#allocation7 + $0x264] sm:$0xf0] }
 0x230   :  { %v245_v46 = vmax.f32 %v218_v44, 0.0  ;;  %744 = vmatpush.bf16.msra.mxu3 %v1205_v37  ;;  %v1192_v44 = vld [vmem:[#allocation7 + $0x100] sm:$0xf] }
 0x231   :  { %757 = vmatpush.bf16.msrb.mxu0 %v1277_v43  ;;  %v1424_v43 = vld [vmem:[#allocation7 + $0x2d0] sm:$0xf] }
 0x232   :  { %v247_v47 = vpack.c.bf16 %v245_v46, %v243_v45  ;;  %v1479_v45 = vld [vmem:[#allocation7 + $0x104] sm:$0xf0]  ;;  %v1478_v46 = vld [vmem:[#allocation7 + $0x104] sm:$0xf] }
 0x233   :  { %v1197_v49 = vor.u32 %v1478_v46, %v1194_v48  ;;  %730 = vmatpush.bf16.msra.mxu2 %v1265_v53  ;;  %v1522_v46 = vld [vmem:[#allocation7 + $0x264] sm:$0xf]  ;;  %v1360_v53 = vld [vmem:[#allocation7 + $0x250] sm:$0xf] }
 0x234   :  { %456 = vmatmul.bf16.vlgmr.msra.gmra.mxu1 %v247_v47  ;;  %484 = vmatmul.bf16.vlgmr.msrb.gmra.mxu3 %v247_v47  ;;  %v1193_v47 = vor.u32 %v1479_v45, %v1192_v44  ;;  %v1369_v44 = vor.u32 %v1523_v42, %v1368_v41  ;;  %v1537_v45 = vld [vmem:[#allocation7 + $0x2d4] sm:$0xf0]  ;;  %v1361_v56 = vor.u32 %v1521_v54, %v1360_v53  ;;  %v1527_v41 = vld [vmem:[#allocation7 + $0x284] sm:$0xf0]  ;;  %v1512_v42 = vld [vmem:[#allocation7 + $0x214] sm:$0xf] }
 0x235   :  { %745 = vmatpush.bf16.msra.mxu3 %v1197_v49  ;;  %758 = vmatpush.bf16.msrb.mxu0 %v1269_v55  ;;  %v1425_v48 = vor.u32 %v1537_v45, %v1424_v43  ;;  %v1416_v55 = vld [vmem:[#allocation7 + $0x2c0] sm:$0xf]  ;;  %v1330_v43 = vld [vmem:[#allocation7 + $0x218] sm:$0xf0]  ;;  %v1322_v53 = vld [vmem:[#allocation7 + $0x208] sm:$0xf0] }
 0x236   :  { %717 = vmatpush.bf16.msrb.mxu1 %v1193_v47  ;;  %v1370_v47 = vld [vmem:[#allocation7 + $0x268] sm:$0xf0]  ;;  %v1417_v60 = vor.u32 %v1535_v57, %v1416_v55  ;;  %v1333_v45 = vor.u32 %v1512_v42, %v1330_v43  ;;  %v1325_v54 = vor.u32 %v1510_v51, %v1322_v53 }
 0x237   :  { %731 = vmatpush.bf16.msra.mxu2 %v1257_v59  ;;  %v1373_v49 = vor.u32 %v1522_v46, %v1370_v47  ;;  %v1362_v59 = vld [vmem:[#allocation7 + $0x258] sm:$0xf0]  ;;  %v1526_v46 = vld [vmem:[#allocation7 + $0x284] sm:$0xf]  ;;  %v1386_v47 = vld [vmem:[#allocation7 + $0x288] sm:$0xf0] }
 0x239   :  { %759 = vmatpush.bf16.msrb.mxu0 %v1261_v61  ;;  %1000 = vmatpush.bf16.msrb.mxu3 %v1381_v16  ;;  %v1365_v61 = vor.u32 %v1520_v58, %v1362_v59  ;;  %v1517_v16 = vld [vmem:[#allocation7 + $0x234] sm:$0xf0] }
 0x23a   :  { %972 = vmatpush.bf16.msra.mxu1 %v1377_v8  ;;  %v1518_v8 = vld [vmem:[#allocation7 + $0x244] sm:$0xf]  ;;  %v1345_v18 = vor.u32 %v1517_v16, %v1344_v15 }
 0x23b   :  { %986 = vmatpush.bf16.msrb.mxu2 %v1441_v1  ;;  %v1352_v1 = vld [vmem:[#allocation7 + $0x240] sm:$0xf]  ;;  %v1357_v11 = vor.u32 %v1518_v8, %v1354_v9 }
 0x23c   :  { %v1353_v6 = vor.u32 %v1519_v2, %v1352_v1 }
 0x23d   :  { %1014 = vmatpush.bf16.msra.mxu0 %v1445_v7  ;;  %1001 = vmatpush.bf16.msrb.mxu3 %v1373_v49  ;;  %v1533_v7 = vld [vmem:[#allocation7 + $0x2b4] sm:$0xf0]  ;;  %v1320_v49 = vld [vmem:[#allocation7 + $0x200] sm:$0xf] }
 0x23e   :  { %973 = vmatpush.bf16.msra.mxu1 %v1369_v44  ;;  %v1409_v10 = vor.u32 %v1533_v7, %v1408_v3 }
 0x23f   :  { %987 = vmatpush.bf16.msrb.mxu2 %v1433_v12  ;;  %v1532_v12 = vld [vmem:[#allocation7 + $0x2b4] sm:$0xf] }
 0x240   :  { %v1413_v14 = vor.u32 %v1532_v12, %v1410_v13 }
 0x241   :  { %1015 = vmatpush.bf16.msra.mxu0 %v1437_v17  ;;  %1002 = vmatpush.bf16.msrb.mxu3 %v1365_v61  ;;  %v1400_v17 = vld [vmem:[#allocation7 + $0x2a0] sm:$0xf] }
 0x242   :  { %974 = vmatpush.bf16.msra.mxu1 %v1361_v56  ;;  %v544_v56 = vld [vmem:[#allocation5 + $0x105] ss:$8 sm:$0x3] }
 0x243   :  { %988 = vmatpush.bf16.msrb.mxu2 %v1425_v48  ;;  %v1389_v48 = vor.u32 %v1526_v46, %v1386_v47  ;;  %v547_v59 = vperm.slane %v544_v56, 1  ;;  %v546_v62 = vperm.slane %v544_v56, 0 }
 0x245   :  { %1016 = vmatpush.bf16.msra.mxu0 %v1429_v52  ;;  %1003 = vmatpush.bf16.msrb.mxu3 %v1357_v11  ;;  %v1321_v52 = vor.u32 %v1511_v50, %v1320_v49 }
 0x246   :  { %975 = vmatpush.bf16.msra.mxu1 %v1353_v6 }
 0x247   :  { %989 = vmatpush.bf16.msrb.mxu2 %v1417_v60 }
 0x249   :  { %1017 = vmatpush.bf16.msra.mxu0 %v1421_v0 }
 0x24a   :  { %976 = vmatpush.bf16.msra.mxu1 %v1345_v18  ;;  %v806_v18 = vld [vmem:[#allocation5 + $0x106] ss:$8 sm:$0x3] }
 0x24b   :  { %990 = vmatpush.bf16.msrb.mxu2 %v1409_v10 }
 0x24d   :  { %1018 = vmatpush.bf16.msra.mxu0 %v1413_v14 }
 0x2ab   :  { %v499_v23 = vpop.f32.mrf.mxu0 }
 0x2b1   :  { %v457_v19 = vpop.f32.mrf.mxu1  ;;  %v471_v20 = vpop.f32.mrf.mxu2 }
 0x2b2   :  { %v458_v22 = vadd.f32 %v457_v19, %v284_v21  ;;  %v1531_v19 = vld [vmem:[#allocation7 + $0x2a4] sm:$0xf0] }
 0x2b3   :  { %v501_v5 = vpop.f32.mrf.mxu0 }
 0x2b4   :  { %v472_v27 = vadd.f32 %v471_v20, %v458_v22  ;;  %v1516_v20 = vld [vmem:[#allocation7 + $0x234] sm:$0xf]  ;;  %v1401_v22 = vor.u32 %v1531_v19, %v1400_v17  ;;  %v808_v19 = vperm.slane %v806_v18, 0 }
 0x2b6   :  { %v504_v4 = vmax.f32 %v472_v27, 0.0  ;;  %991 = vmatpush.bf16.msrb.mxu2 %v1401_v22  ;;  %v1336_v27 = vld [vmem:[#allocation7 + $0x220] sm:$0xf] }
 0x2b7   :  { %v485_v24 = vpop.f32.mrf.mxu3 }
 0x2b8   :  { %v486_v30 = vadd.f32 %v485_v24, %v285_v25  ;;  %v1530_v24 = vld [vmem:[#allocation7 + $0x2a4] sm:$0xf] }
 0x2b9   :  { %v459_v26 = vpop.f32.mrf.mxu1  ;;  %v473_v29 = vpop.f32.mrf.mxu2 }
 0x2ba   :  { %v460_v28 = vadd.f32 %v459_v26, %v284_v21  ;;  %v500_v34 = vadd.f32 %v499_v23, %v486_v30  ;;  %v1346_v21 = vld [vmem:[#allocation7 + $0x238] sm:$0xf0] }
 0x2bb   :  { %v1349_v23 = vor.u32 %v1516_v20, %v1346_v21 }
 0x2bc   :  { %v474_v31 = vadd.f32 %v473_v29, %v460_v28  ;;  %v505_v38 = vmax.f32 %v500_v34, 0.0  ;;  %v1515_v28 = vld [vmem:[#allocation7 + $0x224] sm:$0xf0]  ;;  %v1392_v29 = vld [vmem:[#allocation7 + $0x290] sm:$0xf] }
 0x2bd   :  { %1004 = vmatpush.bf16.msrb.mxu3 %v1349_v23  ;;  %v1337_v30 = vor.u32 %v1515_v28, %v1336_v27 }
 0x2be   :  { %v506_v32 = vmax.f32 %v474_v31, 0.0  ;;  %v1529_v31 = vld [vmem:[#allocation7 + $0x294] sm:$0xf0] }
 0x2bf   :  { %v487_v33 = vpop.f32.mrf.mxu3  ;;  %977 = vmatpush.bf16.msra.mxu1 %v1337_v30 }
 0x2c0   :  { %v508_v35 = vpack.c.bf16 %v506_v32, %v504_v4  ;;  %v488_v36 = vadd.f32 %v487_v33, %v285_v25  ;;  %v1402_v25 = vld [vmem:[#allocation7 + $0x2a8] sm:$0xf0]  ;;  %v1514_v4 = vld [vmem:[#allocation7 + $0x224] sm:$0xf]  ;;  %v1393_v33 = vor.u32 %v1529_v31, %v1392_v29 }
 0x2c1   :  { %v1405_v26 = vor.u32 %v1530_v24, %v1402_v25  ;;  %v1338_v32 = vld [vmem:[#allocation7 + $0x228] sm:$0xf0]  ;;  %v809_v24 = vperm.slane %v806_v18, 1 }
 0x2c2   :  { %v502_v37 = vadd.f32 %v501_v5, %v488_v36  ;;  %718 = vmatmul.bf16.vlgmr.msrb.gmra.mxu1 %v508_v35  ;;  %746 = vmatmul.bf16.vlgmr.msra.gmra.mxu3 %v508_v35  ;;  %v1341_v34 = vor.u32 %v1514_v4, %v1338_v32  ;;  %v1528_v35 = vld [vmem:[#allocation7 + $0x294] sm:$0xf]  ;;  %v1394_v36 = vld [vmem:[#allocation7 + $0x298] sm:$0xf0] }
 0x2c3   :  { %1019 = vmatpush.bf16.msra.mxu0 %v1405_v26  ;;  %v1397_v5 = vor.u32 %v1528_v35, %v1394_v36  ;;  %992 = vmatpush.bf16.msrb.mxu2 %v1393_v33 }
 0x2c4   :  { %v507_v39 = vmax.f32 %v502_v37, 0.0  ;;  %1005 = vmatpush.bf16.msrb.mxu3 %v1341_v34  ;;  %v1328_v37 = vld [vmem:[#allocation7 + $0x210] sm:$0xf] }
 0x2c6   :  { %v509_v40 = vpack.c.bf16 %v507_v39, %v505_v38  ;;  %v1513_v38 = vld [vmem:[#allocation7 + $0x214] sm:$0xf0]  ;;  %v1384_v39 = vld [vmem:[#allocation7 + $0x280] sm:$0xf] }
 0x2c7   :  { %1020 = vmatpush.bf16.msra.mxu0 %v1397_v5  ;;  %v1385_v44 = vor.u32 %v1527_v41, %v1384_v39 }
 0x2c8   :  { %732 = vmatmul.bf16.vlgmr.msra.gmra.mxu2 %v509_v40  ;;  %760 = vmatmul.bf16.vlgmr.msrb.gmra.mxu0 %v509_v40  ;;  %v1329_v40 = vor.u32 %v1513_v38, %v1328_v37 }
 0x2c9   :  { %993 = vmatpush.bf16.msrb.mxu2 %v1385_v44  ;;  %1006 = vmatpush.bf16.msrb.mxu3 %v1333_v45 }
 0x2ca   :  { %978 = vmatpush.bf16.msra.mxu1 %v1329_v40 }
 0x2cb   :  { %1021 = vmatpush.bf16.msra.mxu0 %v1389_v48 }
 0x2cd   :  { %1007 = vmatpush.bf16.msrb.mxu3 %v1325_v54 }
 0x2ce   :  { %979 = vmatpush.bf16.msra.mxu1 %v1321_v52 }
 0x33f   :  { %v719_v55 = vpop.f32.mrf.mxu1 }
 0x340   :  { %v720_v6 = vadd.f32 %v719_v55, %v546_v62 }
 0x345   :  { %v747_v57 = vpop.f32.mrf.mxu3  ;;  %v761_v58 = vpop.f32.mrf.mxu0 }
 0x346   :  { %v748_v60 = vadd.f32 %v747_v57, %v547_v59 }
 0x347   :  { %v721_v2 = vpop.f32.mrf.mxu1 }
 0x348   :  { %v762_v0 = vadd.f32 %v761_v58, %v748_v60  ;;  %v722_v9 = vadd.f32 %v721_v2, %v546_v62 }
 0x34a   :  { %v767_v8 = vmax.f32 %v762_v0, 0.0 }
 0x34b   :  { %v733_v61 = vpop.f32.mrf.mxu2 }
 0x34c   :  { %v734_v10 = vadd.f32 %v733_v61, %v720_v6 }
 0x34d   :  { %v749_v63 = vpop.f32.mrf.mxu3  ;;  %v763_v3 = vpop.f32.mrf.mxu0 }
 0x34e   :  { %v750_v1 = vadd.f32 %v749_v63, %v547_v59  ;;  %v766_v15 = vmax.f32 %v734_v10, 0.0 }
 0x350   :  { %v764_v7 = vadd.f32 %v763_v3, %v750_v1 }
 0x352   :  { %v769_v11 = vmax.f32 %v764_v7, 0.0 }
 0x353   :  { %v735_v12 = vpop.f32.mrf.mxu2 }
 0x354   :  { %v771_v13 = vpack.c.bf16 %v769_v11, %v767_v8  ;;  %v736_v14 = vadd.f32 %v735_v12, %v722_v9 }
 0x356   :  { %v768_v16 = vmax.f32 %v736_v14, 0.0  ;;  %994 = vmatmul.bf16.vlgmr.msrb.gmra.mxu2 %v771_v13  ;;  %1022 = vmatmul.bf16.vlgmr.msra.gmra.mxu0 %v771_v13 }
 0x358   :  { %v770_v17 = vpack.c.bf16 %v768_v16, %v766_v15 }
 0x35a   :  { %980 = vmatmul.bf16.vlgmr.msra.gmra.mxu1 %v770_v17  ;;  %1008 = vmatmul.bf16.vlgmr.msrb.gmra.mxu3 %v770_v17 }
 0x3d3   :  { %v1023_v25 = vpop.f32.mrf.mxu0 }
 0x3d7   :  { %v981_v20 = vpop.f32.mrf.mxu1 }
 0x3d8   :  { %v982_v21 = vadd.f32 %v981_v20, %v808_v19 }
 0x3d9   :  { %v995_v22 = vpop.f32.mrf.mxu2 }
 0x3da   :  { %v996_v23 = vadd.f32 %v995_v22, %v982_v21 }
 0x3db   :  { %v1025_v34 = vpop.f32.mrf.mxu0 }
 0x3dc   :  { %1028 = vst [vmem:[#allocation8] sm:$0xff] %v996_v23 }
 0x3dd   :  { %v1009_v26 = vpop.f32.mrf.mxu3 }
 0x3de   :  { %v1010_v27 = vadd.f32 %v1009_v26, %v809_v24 }
 0x3df   :  { %v983_v28 = vpop.f32.mrf.mxu1 }
 0x3e0   :  { %v1024_v29 = vadd.f32 %v1023_v25, %v1010_v27  ;;  %v984_v30 = vadd.f32 %v983_v28, %v808_v19 }
 0x3e1   :  { %v997_v31 = vpop.f32.mrf.mxu2 }
 0x3e2   :  { %1029 = vst [vmem:[#allocation8 + $0x8] sm:$0xff] %v1024_v29  ;;  %v998_v4 = vadd.f32 %v997_v31, %v984_v30 }
 0x3e4   :  { %1030 = vst [vmem:[#allocation8 + $0x10] sm:$0xff] %v998_v4 }
 0x3e5   :  { %v1011_v32 = vpop.f32.mrf.mxu3 }
 0x3e6   :  { %v1012_v33 = vadd.f32 %v1011_v32, %v809_v24 }
 0x3e8   :  { %v1026_v35 = vadd.f32 %v1025_v34, %v1012_v33 }
 0x3ea   :  { %1031 = vst [vmem:[#allocation8 + $0x18] sm:$0xff] %v1026_v35 }
 0x3eb   :  { %1044 = dma.vmem_to_hbm [thread:$0]  %s1037_s29, 512, %s1039_s5, [#allocation4], %s1657_s20, %s1657_s20, %s1658_s21  }
 0x3ec   :  { %1654 = dma.done.wait [#allocation4], 512  }
 0x3ed   :  { %1655 = vsyncadd [#allocation4], 4294966784 }
 0x3ee   :  { %1049 = vsyncpa [#allocation3], 1 }
 0x3ef   :  { %1050 = vsyncpa [#allocation6], 1 }
 0x3f0   :  { %1051 = vsyncpa [#allocation4], 1 }

</bundles_post_ra>
